<compile_context>
chip_gen: v5e
topology: v5e:2x2
jax: 0.10.0
libtpu: 0.0.40
codegen_flags: <defaults>
</compile_context>

<pallas_src>
import functools

import jax
import jax.numpy as jnp
from jax.experimental import pallas as pl
from jax.experimental.pallas import tpu as pltpu


def _round_up(x, m):
    return (x + m - 1) // m * m


# ---------------------------------------------------------------------------
# Pallas kernel: fused actor+critic MLP on one batch tile (everything in VMEM).
# ---------------------------------------------------------------------------
def _fused_actor_critic_kernel(x_ref, p_ref, o_ref, *, k_pad, fdim, num_actions):
    """p_ref row layout (all slices 8-row aligned):
         [0, k_pad)                    W1 = [wa1 | wc1]        (k_pad, fdim)
         [k_pad, k_pad+fdim)           W2 = blockdiag(wa2,wc2) (fdim, fdim)
         [k_pad+fdim, k_pad+2*fdim)    W3 (actor cols 0..A-1, critic col A)
         [k_pad+2*fdim, +8)            biases: rows 0/1/2 = b1/b2/b3 (lane-packed)
    """
    w1 = p_ref[0:k_pad, :]
    w2 = p_ref[k_pad:k_pad + fdim, :]
    w3 = p_ref[k_pad + fdim:k_pad + 2 * fdim, :]
    b = p_ref[k_pad + 2 * fdim:k_pad + 2 * fdim + 8, :]
    b1, b2, b3 = b[0:1, :], b[1:2, :], b[2:3, :]

    x = x_ref[...]
    h = jnp.maximum(jnp.dot(x, w1, preferred_element_type=jnp.float32) + b1, 0.0)
    h = jnp.maximum(jnp.dot(h, w2, preferred_element_type=jnp.float32) + b2, 0.0)
    out = jnp.dot(h, w3, preferred_element_type=jnp.float32) + b3

    # tanh only on actor lanes [0, num_actions); critic value sits (untransformed) in
    # lane num_actions; remaining lanes are zero padding.
    lane = jax.lax.broadcasted_iota(jnp.int32, out.shape, 1)
    o_ref[...] = jnp.where(lane < num_actions, jnp.tanh(out), out)


# ---------------------------------------------------------------------------
# Parameter packing (done once, outside the hot path).
# ---------------------------------------------------------------------------
def pack_params(p, num_inputs, num_actions, hidden):
    """Pack the 12 per-layer tensors into one (k_pad + 2*F + 8, F) f32 buffer."""
    H = hidden
    F = _round_up(2 * hidden, 128)          # fused lane width (128 for hidden=64)
    k_pad = _round_up(num_inputs, 8)        # 27 -> 32

    w1 = jnp.zeros((k_pad, F), jnp.float32)
    w1 = w1.at[:num_inputs, :H].set(p["wa1"]).at[:num_inputs, H:2 * H].set(p["wc1"])

    w2 = jnp.zeros((F, F), jnp.float32)
    w2 = w2.at[:H, :H].set(p["wa2"]).at[H:2 * H, H:2 * H].set(p["wc2"])

    w3 = jnp.zeros((F, F), jnp.float32)
    w3 = w3.at[:H, :num_actions].set(p["wa3"])
    w3 = w3.at[H:2 * H, num_actions:num_actions + 1].set(p["wc3"])

    b = jnp.zeros((8, F), jnp.float32)
    b = b.at[0, :H].set(p["ba1"][0]).at[0, H:2 * H].set(p["bc1"][0])
    b = b.at[1, :H].set(p["ba2"][0]).at[1, H:2 * H].set(p["bc2"][0])
    b = b.at[2, :num_actions].set(p["ba3"][0]).at[2, num_actions].set(p["bc3"][0, 0])

    return jnp.concatenate([w1, w2, w3, b], axis=0)


# ---------------------------------------------------------------------------
# Wrapper: batch-tiled pallas_call.
# ---------------------------------------------------------------------------
def actor_critic_forward(state, packed_params, *, num_inputs, num_actions, hidden,
                         block_batch=512):
    """state: (B, num_inputs) f32 -> (action_mean (B, num_actions), value (B, 1))."""
    B = state.shape[0]
    F = _round_up(2 * hidden, 128)
    k_pad = _round_up(num_inputs, 8)
    P = packed_params.shape[0]

    B8 = _round_up(B, 8)
    TB = min(block_batch, B8)               # batch tile (rows per grid step)
    B_pad = _round_up(B8, TB)

    # Pad batch rows and feature (K) dim; zero padding is mathematically inert.
    x = jnp.zeros((B_pad, k_pad), jnp.float32).at[:B, :num_inputs].set(state)

    kernel = functools.partial(
        _fused_actor_critic_kernel, k_pad=k_pad, fdim=F, num_actions=num_actions)

    out = pl.pallas_call(
        kernel,
        out_shape=jax.ShapeDtypeStruct((B_pad, F), jnp.float32),
        grid=(B_pad // TB,),
        in_specs=[
            pl.BlockSpec((TB, k_pad), lambda i: (i, 0)),   # batch-tiled state
            pl.BlockSpec((P, F), lambda i: (0, 0)),        # params: VMEM-resident
        ],
        out_specs=pl.BlockSpec((TB, F), lambda i: (i, 0)), # lane-dense fused output
        compiler_params=pltpu.CompilerParams(
            dimension_semantics=("parallel",)),            # megacore split on v7x
    )(x, packed_params)

    mean = out[:B, :num_actions]
    value = out[:B, num_actions:num_actions + 1]
    return mean, value


# ---------------------------------------------------------------------------
# Deterministic parameter init (PyTorch nn.Linear-style uniform(-1/sqrt(fan_in), +)).
# Weights stored transposed: (in_features, out_features); biases (1, out_features).
# ---------------------------------------------------------------------------
def init_linear(key, fan_in, fan_out):
    kw, kb = jax.random.split(key)
    bound = 1.0 / jnp.sqrt(jnp.float32(fan_in))
    w = jax.random.uniform(kw, (fan_in, fan_out), jnp.float32, -bound, bound)
    b = jax.random.uniform(kb, (1, fan_out), jnp.float32, -bound, bound)
    return w, b


def init_params(key, num_inputs, num_actions, hidden_size):
    keys = jax.random.split(key, 6)
    p = {}
    p["wa1"], p["ba1"] = init_linear(keys[0], num_inputs, hidden_size)
    p["wa2"], p["ba2"] = init_linear(keys[1], hidden_size, hidden_size)
    p["wa3"], p["ba3"] = init_linear(keys[2], hidden_size, num_actions)
    p["wc1"], p["bc1"] = init_linear(keys[3], num_inputs, hidden_size)
    p["wc2"], p["bc2"] = init_linear(keys[4], hidden_size, 1 * hidden_size)
    p["wc3"], p["bc3"] = init_linear(keys[5], hidden_size, 1)
    return p


# Pure-JAX reference (unfused, same math as the PyTorch module).
def reference_forward(state, p):
    h = jnp.maximum(state @ p["wa1"] + p["ba1"], 0.0)
    h = jnp.maximum(h @ p["wa2"] + p["ba2"], 0.0)
    mean = jnp.tanh(h @ p["wa3"] + p["ba3"])
    c = jnp.maximum(state @ p["wc1"] + p["bc1"], 0.0)
    c = jnp.maximum(c @ p["wc2"] + p["bc2"], 0.0)
    value = c @ p["wc3"] + p["bc3"]
    return mean, value


if __name__ == "__main__":
    # Ant-v4: 27-dim observation, 8-dim action; hidden_size = 64 (as in the module).
    num_inputs = 27
    num_actions = 8
    hidden_size = 64

    key = jax.random.PRNGKey(0)
    k_params, k_state1, k_state2 = jax.random.split(key, 3)

    params = init_params(k_params, num_inputs, num_actions, hidden_size)
    packed = pack_params(params, num_inputs, num_actions, hidden_size)

    # --- small batch (single grid step) ---
    state = jax.random.normal(k_state1, (8, num_inputs), jnp.float32)
    mean, value = actor_critic_forward(
        state, packed, num_inputs=num_inputs, num_actions=num_actions, hidden=hidden_size)
    mean = jax.block_until_ready(mean)
    value = jax.block_until_ready(value)
    ref_mean, ref_value = reference_forward(state, params)
    assert mean.shape == (8, num_actions) and value.shape == (8, 1)
    assert jnp.allclose(mean, ref_mean, atol=1e-4, rtol=1e-4)
    assert jnp.allclose(value, ref_value, atol=1e-4, rtol=1e-4)

    # --- larger (still small) batch exercising the multi-tile grid path ---
    state2 = jax.random.normal(k_state2, (300, num_inputs), jnp.float32)
    mean2, value2 = actor_critic_forward(
        state2, packed, num_inputs=num_inputs, num_actions=num_actions, hidden=hidden_size,
        block_batch=128)
    mean2 = jax.block_until_ready(mean2)
    value2 = jax.block_until_ready(value2)
    ref_mean2, ref_value2 = reference_forward(state2, params)
    assert mean2.shape == (300, num_actions) and value2.shape == (300, 1)
    assert jnp.allclose(mean2, ref_mean2, atol=1e-4, rtol=1e-4)
    assert jnp.allclose(value2, ref_value2, atol=1e-4, rtol=1e-4)

    print("KERNEL_OK")
</pallas_src>

<mosaic_0001>
module attributes {stable_mosaic.version = 11 : i64} {
  func.func @_fused_actor_critic_kernel(%arg0: i32, %arg1: memref<8x32xf32, #tpu.memory_space<vmem>>, %arg2: memref<296x128xf32, #tpu.memory_space<vmem>>, %arg3: memref<8x128xf32, #tpu.memory_space<vmem>>) attributes {dimension_semantics = [#tpu.dimension_semantics<parallel>], iteration_bounds = array<i64: 1>, scalar_prefetch = 0 : i64, scratch_operands = 0 : i64, tpu.core_type = #tpu.core_type<tc>, window_params = [{transform_indices = @transform_0, window_bounds = array<i64: 8, 32>}, {pipeline_mode = #tpu.pipeline_mode<synchronous>, transform_indices = @transform_1, window_bounds = array<i64: 296, 128>}, {transform_indices = @transform_2, window_bounds = array<i64: 8, 128>}]} {
    %c0 = arith.constant 0 : index
    %c0_0 = arith.constant 0 : index
    %0 = vector.load %arg2[%c0, %c0_0] : memref<296x128xf32, #tpu.memory_space<vmem>>, vector<32x128xf32>
    %c32 = arith.constant 32 : index
    %c0_1 = arith.constant 0 : index
    %1 = vector.load %arg2[%c32, %c0_1] : memref<296x128xf32, #tpu.memory_space<vmem>>, vector<128x128xf32>
    %c160 = arith.constant 160 : index
    %c0_2 = arith.constant 0 : index
    %2 = vector.load %arg2[%c160, %c0_2] : memref<296x128xf32, #tpu.memory_space<vmem>>, vector<128x128xf32>
    %c288 = arith.constant 288 : index
    %c0_3 = arith.constant 0 : index
    %3 = vector.load %arg2[%c288, %c0_3] : memref<296x128xf32, #tpu.memory_space<vmem>>, vector<8x128xf32>
    %4 = vector.extract_strided_slice %3 {offsets = [0, 0], sizes = [1, 128], strides = [1, 1]} : vector<8x128xf32> to vector<1x128xf32>
    %5 = vector.extract_strided_slice %3 {offsets = [1, 0], sizes = [1, 128], strides = [1, 1]} : vector<8x128xf32> to vector<1x128xf32>
    %6 = vector.extract_strided_slice %3 {offsets = [2, 0], sizes = [1, 128], strides = [1, 1]} : vector<8x128xf32> to vector<1x128xf32>
    %c0_4 = arith.constant 0 : index
    %c0_5 = arith.constant 0 : index
    %7 = vector.load %arg1[%c0_4, %c0_5] : memref<8x32xf32, #tpu.memory_space<vmem>>, vector<8x32xf32>
    %cst = arith.constant dense<0.000000e+00> : vector<8x128xf32>
    %8 = tpu.matmul %7, %0, %cst {dimension_numbers = #tpu.dot_dimension_numbers<[1], [0], [0], [1], [0, 0, 1, 1], [], []>} : vector<8x32xf32>, vector<32x128xf32>, vector<8x128xf32> -> vector<8x128xf32>
    %9 = vector.broadcast %4 : vector<1x128xf32> to vector<8x128xf32>
    %10 = arith.addf %8, %9 : vector<8x128xf32>
    %cst_6 = arith.constant 0.000000e+00 : f32
    %11 = vector.broadcast %cst_6 : f32 to vector<8x128xf32>
    %12 = arith.maximumf %10, %11 : vector<8x128xf32>
    %cst_7 = arith.constant dense<0.000000e+00> : vector<8x128xf32>
    %13 = tpu.matmul %12, %1, %cst_7 {dimension_numbers = #tpu.dot_dimension_numbers<[1], [0], [0], [1], [0, 0, 1, 1], [], []>} : vector<8x128xf32>, vector<128x128xf32>, vector<8x128xf32> -> vector<8x128xf32>
    %14 = vector.broadcast %5 : vector<1x128xf32> to vector<8x128xf32>
    %15 = arith.addf %13, %14 : vector<8x128xf32>
    %cst_8 = arith.constant 0.000000e+00 : f32
    %16 = vector.broadcast %cst_8 : f32 to vector<8x128xf32>
    %17 = arith.maximumf %15, %16 : vector<8x128xf32>
    %cst_9 = arith.constant dense<0.000000e+00> : vector<8x128xf32>
    %18 = tpu.matmul %17, %2, %cst_9 {dimension_numbers = #tpu.dot_dimension_numbers<[1], [0], [0], [1], [0, 0, 1, 1], [], []>} : vector<8x128xf32>, vector<128x128xf32>, vector<8x128xf32> -> vector<8x128xf32>
    %19 = vector.broadcast %6 : vector<1x128xf32> to vector<8x128xf32>
    %20 = arith.addf %18, %19 : vector<8x128xf32>
    %21 = tpu.iota {dimensions = array<i32: 1>} : vector<8x128xi32>
    %c8_i32 = arith.constant 8 : i32
    %22 = vector.broadcast %c8_i32 : i32 to vector<8x128xi32>
    %23 = arith.cmpi slt, %21, %22 : vector<8x128xi32>
    %24 = math.tanh %20 : vector<8x128xf32>
    %25 = arith.select %23, %24, %20 : vector<8x128xi1>, vector<8x128xf32>
    %c0_10 = arith.constant 0 : index
    %c0_11 = arith.constant 0 : index
    %26 = vector.load %arg3[%c0_10, %c0_11] : memref<8x128xf32, #tpu.memory_space<vmem>>, vector<8x128xf32>
    tpu.vector_store %arg3[%c0_10, %c0_11], %25 {strides = array<i32>} : memref<8x128xf32, #tpu.memory_space<vmem>>, vector<8x128xf32>,
    return
  }
  func.func @transform_0(%arg0: i32) -> (i32, i32) {
    %c0_i32 = arith.constant 0 : i32
    %c0_i32_0 = arith.constant 0 : i32
    return %arg0, %c0_i32 : i32, i32
  }
  func.func @transform_1(%arg0: i32) -> (i32, i32) {
    %c0_i32 = arith.constant 0 : i32
    %c0_i32_0 = arith.constant 0 : i32
    %c0_i32_1 = arith.constant 0 : i32
    return %c0_i32, %c0_i32_0 : i32, i32
  }
  func.func @transform_2(%arg0: i32) -> (i32, i32) {
    %c0_i32 = arith.constant 0 : i32
    %c0_i32_0 = arith.constant 0 : i32
    return %arg0, %c0_i32 : i32, i32
  }
}

</mosaic_0001>

<bundles_post_ra>
// kernel: tpu_custom_call.1
= control target key start
LH: loop header
LB: loop body
LE: loop exit
PB: predicated region body
PF: predicated region fallthrough
CT: control target
= control target key end

     0   :  { %7 = vsyncpa [#allocation3], 0  ;;  %s288_s0 = inlined_call_operand.hbm [shape: f32[8,32], index: 0, kind: input, shape index: {}]   ;;  %s289_s1 = inlined_call_operand.hbm [shape: f32[296,128], index: 1, kind: input, shape index: {}]   ;;  %s290_s2 = inlined_call_operand.hbm [shape: f32[8,128], index: 2, kind: output, shape index: {}]  }
   0x1   :  { %8 = vsyncpa [#allocation6], 0 }
   0x2   :  { %9 = vsyncpa [#allocation4], 0  ;;  %s15_s11 = sshll.u32 %s288_s0, 4  ;;  %s259_s12 = smov [#allocation2]   ;;  %s16_s11 = int_to_ptr.hbm [resolvable:$true] %s15_s11 }
   0x3   :  { %s17_s13 = sshll.u32 %s259_s12, 4  ;;  %s25_s16 = sshll.u32 %s289_s1, 4  ;;  %s18_s13 = int_to_ptr.vmem [resolvable:$true] %s17_s13  ;;  %s26_s16 = int_to_ptr.hbm [resolvable:$true] %s25_s16 }
   0x4   :  { %20 = dma.hbm_to_vmem [thread:$0]  %s16_s11, 128, %s18_s13, [#allocation3]  }
   0x5   :  { %s260_s17 = smov [#allocation5]   ;;  %s261_s19 = smov 128  }
   0x6   :  { %s27_s18 = sshll.u32 %s260_s17, 4  ;;  %s262_s20 = smov 8   ;;  %s28_s18 = int_to_ptr.vmem [resolvable:$true] %s27_s18 }
   0x7   :  { %33 = dma.hbm_to_vmem [thread:$0]  %s26_s16, 4736, %s28_s18, [#allocation6], %s261_s19, %s261_s19, %s262_s20  }
   0x8   :  { %253 = dma.done.wait [#allocation3], 128  }
   0x9   :  { %254 = vsyncadd [#allocation3], 4294967168 }
   0xa   :  { %255 = dma.done.wait [#allocation6], 4736  }
   0xb   :  { %256 = vsyncadd [#allocation6], 4294962560  ;;  %v45_v0 = vld [vmem:[#allocation5 + $0x18] sm:$0xff]  ;;  %v44_v1 = vld [vmem:[#allocation5 + $0x10] sm:$0xff]  ;;  %vm81_vm0 = vcmask 261120   ;;  %v149_v47 = vlaneseq  ;;  %s263_s0 = smov [#allocation7]  }
   0xc   :  { %97 = vmatpush.msra.mxu0 %v45_v0  ;;  %v61_v2 = vld [vmem:[#allocation5 + $0x98] sm:$0xff]  ;;  %v43_v3 = vld [vmem:[#allocation5 + $0x8] sm:$0xff]  ;;  %v60_v4 = vld [vmem:[#allocation5 + $0x90] sm:$0xff]  ;;  %s160_s1 = sshll.u32 %s263_s0, 4  ;;  %s162_s23 = sshll.u32 %s290_s2, 4  ;;  %s161_s1 = int_to_ptr.vmem [resolvable:$true] %s160_s1  ;;  %s163_s23 = int_to_ptr.hbm [resolvable:$true] %s162_s23 }
   0xd   :  { %107 = vmatpush.msra.mxu1 %v61_v2  ;;  %v59_v5 = vld [vmem:[#allocation5 + $0x88] sm:$0xff]  ;;  %v42_v6 = vld [vmem:[#allocation5] sm:$0xff]  ;;  %v79_v7 = vld [vmem:[#allocation2] sm:$0xff]  ;;  %v150_v50 = vand.u32 127, %v149_v47 }
   0xe   :  { %98 = vmatpush.msra.mxu0 %v44_v1  ;;  %v58_v8 = vld [vmem:[#allocation5 + $0x80] sm:$0xff]  ;;  %v57_v9 = vld [vmem:[#allocation5 + $0x78] sm:$0xff]  ;;  %v56_v10 = vld [vmem:[#allocation5 + $0x70] sm:$0xff] }
   0xf   :  { %108 = vmatpush.msra.mxu1 %v60_v4  ;;  %v55_v11 = vld [vmem:[#allocation5 + $0x68] sm:$0xff]  ;;  %v54_v12 = vld [vmem:[#allocation5 + $0x60] sm:$0xff]  ;;  %v53_v13 = vld [vmem:[#allocation5 + $0x58] sm:$0xff]  ;;  %vm151_vm1 = vcmp.lt.s32.totalorder %v150_v50, 8 }
  0x10   :  { %99 = vmatpush.msra.mxu0 %v43_v3  ;;  %v52_v14 = vld [vmem:[#allocation5 + $0x50] sm:$0xff]  ;;  %v51_v15 = vld [vmem:[#allocation5 + $0x48] sm:$0xff]  ;;  %v50_v16 = vld [vmem:[#allocation5 + $0x40] sm:$0xff] }
  0x11   :  { %109 = vmatpush.msra.mxu1 %v59_v5  ;;  %v49_v17 = vld [vmem:[#allocation5 + $0x38] sm:$0xff]  ;;  %v48_v18 = vld [vmem:[#allocation5 + $0x30] sm:$0xff]  ;;  %v47_v19 = vld [vmem:[#allocation5 + $0x28] sm:$0xff] }
  0x12   :  { %100 = vmatpush.msra.mxu0 %v42_v6  ;;  %v46_v20 = vld [vmem:[#allocation5 + $0x20] sm:$0xff]  ;;  %v77_v21 = vld [vmem:[#allocation5 + $0x118] sm:$0xff]  ;;  %v76_v22 = vld [vmem:[#allocation5 + $0x110] sm:$0xff] }
  0x13   :  { %173 = vmatmul.msk.f32.vlgmr.msra.gmra.mxu0 %vm81_vm0, %v79_v7  ;;  %110 = vmatpush.msra.mxu1 %v58_v8  ;;  %v75_v23 = vld [vmem:[#allocation5 + $0x108] sm:$0xff]  ;;  %v74_v24 = vld [vmem:[#allocation5 + $0x100] sm:$0xff]  ;;  %v73_v25 = vld [vmem:[#allocation5 + $0xf8] sm:$0xff] }
  0x14   :  { %129 = vmatpush.msra.mxu2 %v77_v21  ;;  %v72_v26 = vld [vmem:[#allocation5 + $0xf0] sm:$0xff]  ;;  %v71_v27 = vld [vmem:[#allocation5 + $0xe8] sm:$0xff]  ;;  %v70_v28 = vld [vmem:[#allocation5 + $0xe0] sm:$0xff] }
  0x15   :  { %111 = vmatpush.msra.mxu1 %v57_v9  ;;  %v69_v29 = vld [vmem:[#allocation5 + $0xd8] sm:$0xff]  ;;  %v68_v30 = vld [vmem:[#allocation5 + $0xd0] sm:$0xff]  ;;  %v67_v31 = vld [vmem:[#allocation5 + $0xc8] sm:$0xff] }
  0x16   :  { %130 = vmatpush.msra.mxu2 %v76_v22  ;;  %v66_v32 = vld [vmem:[#allocation5 + $0xc0] sm:$0xff]  ;;  %v65_v34 = vld [vmem:[#allocation5 + $0xb8] sm:$0xff]  ;;  %v64_v39 = vld [vmem:[#allocation5 + $0xb0] sm:$0xff] }
  0x17   :  { %112 = vmatpush.msra.mxu1 %v56_v10  ;;  %v78_v33 = vld [vmem:[#allocation5 + $0x120] sm:$0xff]  ;;  %v63_v40 = vld [vmem:[#allocation5 + $0xa8] sm:$0xff] }
  0x18   :  { %131 = vmatpush.msra.mxu2 %v75_v23  ;;  %v80_v35 = vperm.slane %v78_v33, 0  ;;  %v62_v41 = vld [vmem:[#allocation5 + $0xa0] sm:$0xff]  ;;  %v106_v42 = vperm.slane %v78_v33, 1  ;;  %v128_v46 = vperm.slane %v78_v33, 2 }
  0x19   :  { %113 = vmatpush.msra.mxu1 %v55_v11 }
  0x1a   :  { %132 = vmatpush.msra.mxu2 %v74_v24 }
  0x1b   :  { %114 = vmatpush.msra.mxu1 %v54_v12 }
  0x1c   :  { %133 = vmatpush.msra.mxu2 %v73_v25 }
  0x1d   :  { %115 = vmatpush.msra.mxu1 %v53_v13 }
  0x1e   :  { %134 = vmatpush.msra.mxu2 %v72_v26 }
  0x1f   :  { %116 = vmatpush.msra.mxu1 %v52_v14 }
  0x20   :  { %135 = vmatpush.msra.mxu2 %v71_v27 }
  0x21   :  { %117 = vmatpush.msra.mxu1 %v51_v15 }
  0x22   :  { %136 = vmatpush.msra.mxu2 %v70_v28 }
  0x23   :  { %118 = vmatpush.msra.mxu1 %v50_v16 }
  0x24   :  { %137 = vmatpush.msra.mxu2 %v69_v29 }
  0x25   :  { %119 = vmatpush.msra.mxu1 %v49_v17 }
  0x26   :  { %138 = vmatpush.msra.mxu2 %v68_v30 }
  0x27   :  { %120 = vmatpush.msra.mxu1 %v48_v18 }
  0x28   :  { %139 = vmatpush.msra.mxu2 %v67_v31 }
  0x29   :  { %121 = vmatpush.msra.mxu1 %v47_v19 }
  0x2a   :  { %140 = vmatpush.msra.mxu2 %v66_v32 }
  0x2b   :  { %122 = vmatpush.msra.mxu1 %v46_v20 }
  0x2c   :  { %141 = vmatpush.msra.mxu2 %v65_v34 }
  0x2e   :  { %142 = vmatpush.msra.mxu2 %v64_v39 }
  0x30   :  { %143 = vmatpush.msra.mxu2 %v63_v40 }
  0x32   :  { %144 = vmatpush.msra.mxu2 %v62_v41 }
  0x90   :  { %v102_v36 = vpop.f32.mrf.mxu0 }
  0x91   :  { %v103_v37 = vadd.f32 %v102_v36, %v80_v35 }
  0x93   :  { %v105_v38 = vmax.f32 %v103_v37, 0.0 }
  0x95   :  { %123 = vmatmul.f32.vlgmr.msra.gmra.mxu1 %v105_v38 }
 0x112   :  { %v124_v43 = vpop.f32.mrf.mxu1 }
 0x113   :  { %v125_v44 = vadd.f32 %v124_v43, %v106_v42 }
 0x115   :  { %v127_v45 = vmax.f32 %v125_v44, 0.0 }
 0x117   :  { %145 = vmatmul.f32.vlgmr.msra.gmra.mxu2 %v127_v45 }
 0x19a   :  { %v146_v48 = vpop.f32.mrf.mxu2 }
 0x19b   :  { %v147_v49 = vadd.f32 %v146_v48, %v128_v46 }
 0x19d   :  { %179 = vtanh.f32 %v147_v49 }
 0x1a3   :  { %v180_v51 = vpop.eup %179 }
 0x1a4   :  { %v153_v52 = vsel %vm151_vm1, %v180_v51, %v147_v49 }
 0x1a5   :  { %154 = vst [vmem:[#allocation7] sm:$0xff] %v153_v52 }
 0x1a6   :  { %165 = dma.vmem_to_hbm [thread:$0]  %s161_s1, 128, %s163_s23, [#allocation4]  }
 0x1a7   :  { %257 = dma.done.wait [#allocation4], 128  }
 0x1a8   :  { %258 = vsyncadd [#allocation4], 4294967168 }
 0x1a9   :  { %170 = vsyncpa [#allocation3], 1 }
 0x1aa   :  { %171 = vsyncpa [#allocation6], 1 }
 0x1ab   :  { %172 = vsyncpa [#allocation4], 1 }

</bundles_post_ra>
